<compile_context>
chip_gen: v7x
topology: tpu7x:2x2x1
jax: 0.10.0
libtpu: 0.0.40
codegen_flags: <defaults>
</compile_context>

<pallas_src>
from functools import partial

import jax
import jax.numpy as jnp
from jax import lax
from jax.experimental import pallas as pl
from jax.experimental.pallas import tpu as pltpu


# ----------------------------------------------------------------------------
# Pallas kernels
# ----------------------------------------------------------------------------

def _fused_dual_image_kernel(x_ref, wpd_ref, bpd_ref, wpc_ref, bpc_ref,
                             wed_ref, bed_ref, wec_ref, bec_ref,
                             od_ref, oc_ref, fd_scr, fc_scr):
    """Both image streams fused: (proj -> L2norm) once, then encode the current
    d_latent tile.  x is read from HBM once; normalized features stay in VMEM."""
    @pl.when(pl.program_id(0) == 0)
    def _():
        x = x_ref[...]
        fd = jnp.dot(x, wpd_ref[...], preferred_element_type=jnp.float32) + bpd_ref[...]
        fd_scr[...] = fd * lax.rsqrt(jnp.sum(fd * fd, axis=-1, keepdims=True))
        fc = jnp.dot(x, wpc_ref[...], preferred_element_type=jnp.float32) + bpc_ref[...]
        fc_scr[...] = fc * lax.rsqrt(jnp.sum(fc * fc, axis=-1, keepdims=True))

    cd = jnp.dot(fd_scr[...], wed_ref[...], preferred_element_type=jnp.float32) + bed_ref[...]
    od_ref[...] = jnp.maximum(cd, 0.0).astype(od_ref.dtype)
    cc = jnp.dot(fc_scr[...], wec_ref[...], preferred_element_type=jnp.float32) + bec_ref[...]
    oc_ref[...] = jnp.maximum(cc, 0.0).astype(oc_ref.dtype)


def _fused_stream_kernel(x_ref, wp_ref, bp_ref, we_ref, be_ref, o_ref, f_scr):
    """Single stream fused: proj -> L2norm (once, VMEM) -> encode current tile."""
    @pl.when(pl.program_id(0) == 0)
    def _():
        f = jnp.dot(x_ref[...], wp_ref[...], preferred_element_type=jnp.float32) + bp_ref[...]
        f_scr[...] = f * lax.rsqrt(jnp.sum(f * f, axis=-1, keepdims=True))

    c = jnp.dot(f_scr[...], we_ref[...], preferred_element_type=jnp.float32) + be_ref[...]
    o_ref[...] = jnp.maximum(c, 0.0).astype(o_ref.dtype)


def _logits_kernel(a_ref, b_ref, o_ref, acc_ref):
    """Cross-modal logits: a @ b.T, K-tiled over d_latent; contraction expressed
    directly via dot_general (no XLU transpose of b)."""
    @pl.when(pl.program_id(0) == 0)
    def _():
        acc_ref[...] = jnp.zeros_like(acc_ref)

    acc_ref[...] += lax.dot_general(
        a_ref[...], b_ref[...],
        dimension_numbers=(((1,), (1,)), ((), ())),
        preferred_element_type=jnp.float32)

    @pl.when(pl.program_id(0) == pl.num_programs(0) - 1)
    def _():
        o_ref[...] = acc_ref[...].astype(o_ref.dtype)


def _rowsum_kernel(x_ref, o_ref, acc_ref):
    """o = x.sum(dim=1, keepdim=True), tiled over the feature axis."""
    @pl.when(pl.program_id(0) == 0)
    def _():
        acc_ref[...] = jnp.zeros_like(acc_ref)

    acc_ref[...] += jnp.sum(x_ref[...].astype(jnp.float32), axis=-1, keepdims=True)

    @pl.when(pl.program_id(0) == pl.num_programs(0) - 1)
    def _():
        o_ref[...] = acc_ref[...]


# ----------------------------------------------------------------------------
# pallas_call wrappers
# ----------------------------------------------------------------------------

_VMEM_LIMIT = 32 * 1024 * 1024  # explicit scoped-VMEM cap; safe on v5e/v6e/v7x


def _rep(shape):
    """Full-array block, constant across the 1-D grid (kept resident in VMEM)."""
    return pl.BlockSpec(shape, lambda j: tuple(0 for _ in shape))


def _pick_latent_tile(L, max_tile=2048):
    """Largest multiple-of-128 divisor of L up to max_tile, else the full dim."""
    if L % 128 != 0:
        return L
    best, t = 128, 128
    while t <= min(L, max_tile):
        if L % t == 0:
            best = t
        t += 128
    return best


def fused_dual_image_encode(x, Wd, bd, Wc, bc, Wed, bed, Wec, bec):
    """(dino_codes, clip_img_codes) = SAE-encode(L2norm(x @ W + b)) for both
    image streams in one kernel; d_latent tiled on the grid."""
    M, K = x.shape
    Dd, Dc = Wd.shape[1], Wc.shape[1]
    L = Wed.shape[1]
    assert Wec.shape[1] == L
    tl = _pick_latent_tile(L)
    grid = (L // tl,)

    cost = pl.CostEstimate(
        flops=2 * M * K * (Dd + Dc) + 2 * M * (Dd + Dc) * L,
        transcendentals=2 * M,
        bytes_accessed=4 * (M * K + K * (Dd + Dc) + (Dd + Dc) * L + 2 * M * L),
    )
    return pl.pallas_call(
        _fused_dual_image_kernel,
        grid=grid,
        in_specs=[
            _rep((M, K)),
            _rep((K, Dd)), _rep((1, Dd)),
            _rep((K, Dc)), _rep((1, Dc)),
            pl.BlockSpec((Dd, tl), lambda j: (0, j)),
            pl.BlockSpec((1, tl), lambda j: (0, j)),
            pl.BlockSpec((Dc, tl), lambda j: (0, j)),
            pl.BlockSpec((1, tl), lambda j: (0, j)),
        ],
        out_specs=(pl.BlockSpec((M, tl), lambda j: (0, j)),
                   pl.BlockSpec((M, tl), lambda j: (0, j))),
        out_shape=(jax.ShapeDtypeStruct((M, L), jnp.float32),
                   jax.ShapeDtypeStruct((M, L), jnp.float32)),
        scratch_shapes=[pltpu.VMEM((M, Dd), jnp.float32),
                        pltpu.VMEM((M, Dc), jnp.float32)],
        compiler_params=pltpu.CompilerParams(
            dimension_semantics=("arbitrary",),   # scratch carried across L tiles
            vmem_limit_bytes=_VMEM_LIMIT),
        cost_estimate=cost,
    )(x, Wd, bd.reshape(1, Dd), Wc, bc.reshape(1, Dc),
      Wed, bed.reshape(1, L), Wec, bec.reshape(1, L))


def fused_stream_encode(x, Wp, bp, We, be):
    """codes = ReLU(L2norm(x @ Wp + bp) @ We + be) in one kernel, L tiled."""
    M, K = x.shape
    D = Wp.shape[1]
    L = We.shape[1]
    tl = _pick_latent_tile(L)
    grid = (L // tl,)

    cost = pl.CostEstimate(
        flops=2 * M * K * D + 2 * M * D * L,
        transcendentals=M,
        bytes_accessed=4 * (M * K + K * D + D * L + M * L),
    )
    return pl.pallas_call(
        _fused_stream_kernel,
        grid=grid,
        in_specs=[
            _rep((M, K)),
            _rep((K, D)), _rep((1, D)),
            pl.BlockSpec((D, tl), lambda j: (0, j)),
            pl.BlockSpec((1, tl), lambda j: (0, j)),
        ],
        out_specs=pl.BlockSpec((M, tl), lambda j: (0, j)),
        out_shape=jax.ShapeDtypeStruct((M, L), jnp.float32),
        scratch_shapes=[pltpu.VMEM((M, D), jnp.float32)],
        compiler_params=pltpu.CompilerParams(
            dimension_semantics=("arbitrary",),
            vmem_limit_bytes=_VMEM_LIMIT),
        cost_estimate=cost,
    )(x, Wp, bp.reshape(1, D), We, be.reshape(1, L))


def pallas_cross_modal_logits(a, b):
    """logits = a @ b.T with the d_latent contraction K-tiled on the grid."""
    M, L = a.shape
    T, Lb = b.shape
    assert L == Lb
    tk = _pick_latent_tile(L)
    return pl.pallas_call(
        _logits_kernel,
        grid=(L // tk,),
        in_specs=[pl.BlockSpec((M, tk), lambda k: (0, k)),
                  pl.BlockSpec((T, tk), lambda k: (0, k))],
        out_specs=pl.BlockSpec((M, T), lambda k: (0, 0)),
        out_shape=jax.ShapeDtypeStruct((M, T), jnp.float32),
        scratch_shapes=[pltpu.VMEM((M, T), jnp.float32)],
        compiler_params=pltpu.CompilerParams(
            dimension_semantics=("arbitrary",),
            vmem_limit_bytes=_VMEM_LIMIT),
    )(a, b)


def pallas_rowsum(x):
    M, L = x.shape
    tl = _pick_latent_tile(L)
    return pl.pallas_call(
        _rowsum_kernel,
        grid=(L // tl,),
        in_specs=[pl.BlockSpec((M, tl), lambda k: (0, k))],
        out_specs=pl.BlockSpec((M, 1), lambda k: (0, 0)),
        out_shape=jax.ShapeDtypeStruct((M, 1), jnp.float32),
        scratch_shapes=[pltpu.VMEM((M, 1), jnp.float32)],
        compiler_params=pltpu.CompilerParams(
            dimension_semantics=("arbitrary",),
            vmem_limit_bytes=_VMEM_LIMIT),
    )(x)


# ----------------------------------------------------------------------------
# TextGuidedSAE in JAX (glue) + fused Pallas hot path
# ----------------------------------------------------------------------------

class TextGuidedSAEPallas:
    def __init__(self, params, k, stream="dino", is_global=True, use_cross_modal=True):
        assert stream in ("dino", "clip_img"), "Stream must be either 'dino' or 'clip_img'"
        if use_cross_modal:
            assert is_global, "Global mode must be enabled for cross-modal computation"
        self.p = params
        self.k = k
        self.stream = stream
        self.is_global = is_global
        self.use_cross_modal = use_cross_modal

    def forward(self, x, text_tokens):
        p = self.p
        B = x.shape[0]
        # NCHW -> [B, C*H*W] row-major flatten (matches torch .reshape).
        x_flat = x.reshape(B, -1).astype(jnp.float32)

        # Pad batch rows up to a sublane multiple (8) by edge replication so the
        # MXU/stores see aligned sublanes; extra rows are sliced away below.
        Bp = max(8, ((B + 7) // 8) * 8)
        if Bp != B:
            pad = jnp.broadcast_to(x_flat[-1:], (Bp - B, x_flat.shape[1]))
            x_flat = jnp.concatenate([x_flat, pad], axis=0)

        # Text path glue: embedding lookup + mean over tokens, then the fused
        # projection/norm/encode kernel.
        # TODO(synk): the real CLIP tokenizer + text tower have no in-script
        # equivalent; a deterministic embedding + linear projection stands in.
        txt_emb = jnp.take(p["tok_embed"], text_tokens, axis=0).mean(axis=1)

        # --- fused encoders (proj -> L2norm -> SAE encode + ReLU) ---
        # TODO(synk): DINO / CLIP vision backbones and the msae's exact sparsify
        # rule are external modules; linear encoders + dense ReLU codes stand in.
        output = {}
        if self.is_global:
            cd, cc = fused_dual_image_encode(
                x_flat,
                p["W_dino"], p["b_dino"], p["W_cimg"], p["b_cimg"],
                p["W_enc_dino"], p["b_enc_dino"], p["W_enc_cimg"], p["b_enc_cimg"])
            ct = fused_stream_encode(
                txt_emb, p["W_ctxt"], p["b_ctxt"], p["W_enc_ctxt"], p["b_enc_ctxt"])
            output["sparse_codes_dino"] = cd
            output["sparse_codes_clip_img"] = cc
            output["sparse_codes_clip_txt"] = ct
        elif self.stream == "dino":
            output["sparse_codes_dino"] = fused_stream_encode(
                x_flat, p["W_dino"], p["b_dino"], p["W_enc_dino"], p["b_enc_dino"])
        elif self.stream == "clip_img":
            output["sparse_codes_clip_img"] = fused_stream_encode(
                x_flat, p["W_cimg"], p["b_cimg"], p["W_enc_cimg"], p["b_enc_cimg"])

        # --- logits ---
        if self.use_cross_modal:
            clip_txt_latent = output.get("sparse_codes_clip_txt")
            clip_img_latent = output.get("sparse_codes_clip_img")
            dino_latent = output.get("sparse_codes_dino")
            if self.stream == "dino" and dino_latent is not None and clip_txt_latent is not None:
                logits = pallas_cross_modal_logits(dino_latent, clip_txt_latent)
            elif self.stream == "clip_img" and clip_img_latent is not None and clip_txt_latent is not None:
                logits = pallas_cross_modal_logits(clip_img_latent, clip_txt_latent)
            logits = logits[:B]
        elif len(self.k) > 0:
            codes = output[f"sparse_codes_{self.stream}"][:B]
            logits = codes[:, jnp.asarray(self.k, dtype=jnp.int32)]
            # Flat argmax over (B, len(k)), matching torch .argmax(); column
            # slice kept in glue JAX (data-dependent scalar index).
            max_dim = jnp.argmax(logits)
            logits = jax.lax.dynamic_slice_in_dim(logits, max_dim, 1, axis=1)
        else:
            logits = pallas_rowsum(output[f"sparse_codes_{self.stream}"])[:B]
        return logits


# ----------------------------------------------------------------------------
# Deterministic parameter construction
# ----------------------------------------------------------------------------

def make_params(key, in_dim, d_dino, d_clip, d_latent, vocab, d_embed):
    ks = jax.random.split(key, 12)
    s = 0.02
    return {
        "W_dino": s * jax.random.normal(ks[0], (in_dim, d_dino), jnp.float32),
        "b_dino": jnp.zeros((d_dino,), jnp.float32),
        "W_cimg": s * jax.random.normal(ks[1], (in_dim, d_clip), jnp.float32),
        "b_cimg": jnp.zeros((d_clip,), jnp.float32),
        "tok_embed": s * jax.random.normal(ks[2], (vocab, d_embed), jnp.float32),
        "W_ctxt": s * jax.random.normal(ks[3], (d_embed, d_clip), jnp.float32),
        "b_ctxt": jnp.zeros((d_clip,), jnp.float32),
        "W_enc_dino": s * jax.random.normal(ks[4], (d_dino, d_latent), jnp.float32),
        "b_enc_dino": 0.01 * jax.random.normal(ks[5], (d_latent,), jnp.float32),
        "W_enc_cimg": s * jax.random.normal(ks[6], (d_clip, d_latent), jnp.float32),
        "b_enc_cimg": 0.01 * jax.random.normal(ks[7], (d_latent,), jnp.float32),
        "W_enc_ctxt": s * jax.random.normal(ks[8], (d_clip, d_latent), jnp.float32),
        "b_enc_ctxt": 0.01 * jax.random.normal(ks[9], (d_latent,), jnp.float32),
    }


if __name__ == "__main__":
    key = jax.random.PRNGKey(0)
    k_x, k_p = jax.random.split(key)

    # Small shapes consistent with the forward pass.
    B, C, H, W = 2, 4, 16, 16             # image batch (NCHW)
    seq_len, vocab, d_embed = 8, 64, 32   # "tokenized" text prompt
    d_dino, d_clip = 32, 32               # feature dims (stay in VMEM, never stored)
    d_latent = 128                        # SAE latent dim: lane-dense (multiple of 128)

    x = jax.random.normal(k_x, (B, C, H, W), jnp.float32)
    # Deterministic stand-in for clip_tokenizer(self.text): one text prompt.
    text_tokens = (jnp.arange(seq_len, dtype=jnp.int32) * 7 % vocab).reshape(1, seq_len)

    params = make_params(k_p, C * H * W, d_dino, d_clip, d_latent, vocab, d_embed)

    model = TextGuidedSAEPallas(
        params, k=[1, 3, 5], stream="dino", is_global=True, use_cross_modal=True
    )
    logits = model.forward(x, text_tokens)   # [B, num_text] = [2, 1]
    jax.block_until_ready(logits)
    assert logits.shape == (B, 1)
    assert bool(jnp.all(jnp.isfinite(logits)))
    print("KERNEL_OK")
</pallas_src>

<mosaic_0001>
module attributes {stable_mosaic.version = 11 : i64} {
  func.func @_fused_dual_image_kernel(%arg0: i32, %arg1: memref<8x1024xf32, #tpu.memory_space<vmem>>, %arg2: memref<1024x32xf32, #tpu.memory_space<vmem>>, %arg3: memref<1x32xf32, #tpu.memory_space<vmem>>, %arg4: memref<1024x32xf32, #tpu.memory_space<vmem>>, %arg5: memref<1x32xf32, #tpu.memory_space<vmem>>, %arg6: memref<32x128xf32, #tpu.memory_space<vmem>>, %arg7: memref<1x128xf32, #tpu.memory_space<vmem>>, %arg8: memref<32x128xf32, #tpu.memory_space<vmem>>, %arg9: memref<1x128xf32, #tpu.memory_space<vmem>>, %arg10: memref<8x128xf32, #tpu.memory_space<vmem>>, %arg11: memref<8x128xf32, #tpu.memory_space<vmem>>, %arg12: memref<8x32xf32, #tpu.memory_space<vmem>>, %arg13: memref<8x32xf32, #tpu.memory_space<vmem>>) attributes {dimension_semantics = [#tpu.dimension_semantics<arbitrary>], iteration_bounds = array<i64: 1>, scalar_prefetch = 0 : i64, scratch_operands = 2 : i64, tpu.core_type = #tpu.core_type<tc>, window_params = [{pipeline_mode = #tpu.pipeline_mode<synchronous>, transform_indices = @transform_0, window_bounds = array<i64: 8, 1024>}, {pipeline_mode = #tpu.pipeline_mode<synchronous>, transform_indices = @transform_1, window_bounds = array<i64: 1024, 32>}, {pipeline_mode = #tpu.pipeline_mode<synchronous>, transform_indices = @transform_2, window_bounds = array<i64: 1, 32>}, {pipeline_mode = #tpu.pipeline_mode<synchronous>, transform_indices = @transform_3, window_bounds = array<i64: 1024, 32>}, {pipeline_mode = #tpu.pipeline_mode<synchronous>, transform_indices = @transform_4, window_bounds = array<i64: 1, 32>}, {transform_indices = @transform_5, window_bounds = array<i64: 32, 128>}, {transform_indices = @transform_6, window_bounds = array<i64: 1, 128>}, {transform_indices = @transform_7, window_bounds = array<i64: 32, 128>}, {transform_indices = @transform_8, window_bounds = array<i64: 1, 128>}, {transform_indices = @transform_9, window_bounds = array<i64: 8, 128>}, {transform_indices = @transform_10, window_bounds = array<i64: 8, 128>}]} {
    %c0_i32 = arith.constant 0 : i32
    %0 = arith.cmpi eq, %arg0, %c0_i32 : i32
    %1 = arith.extui %0 : i1 to i32
    %c0_i32_0 = arith.constant 0 : i32
    %2 = arith.cmpi ne, %1, %c0_i32_0 : i32
    scf.if %2 {
      %c0_19 = arith.constant 0 : index
      %c0_20 = arith.constant 0 : index
      %21 = vector.load %arg1[%c0_19, %c0_20] : memref<8x1024xf32, #tpu.memory_space<vmem>>, vector<8x1024xf32>
      %c0_21 = arith.constant 0 : index
      %c0_22 = arith.constant 0 : index
      %22 = vector.load %arg2[%c0_21, %c0_22] : memref<1024x32xf32, #tpu.memory_space<vmem>>, vector<1024x32xf32>
      %cst_23 = arith.constant dense<0.000000e+00> : vector<8x32xf32>
      %23 = tpu.matmul %21, %22, %cst_23 {dimension_numbers = #tpu.dot_dimension_numbers<[1], [0], [0], [1], [0, 0, 1, 1], [], []>} : vector<8x1024xf32>, vector<1024x32xf32>, vector<8x32xf32> -> vector<8x32xf32>
      %c0_24 = arith.constant 0 : index
      %c0_25 = arith.constant 0 : index
      %24 = vector.load %arg3[%c0_24, %c0_25] : memref<1x32xf32, #tpu.memory_space<vmem>>, vector<1x32xf32>
      %25 = vector.broadcast %24 : vector<1x32xf32> to vector<8x32xf32>
      %26 = arith.addf %23, %25 : vector<8x32xf32>
      %27 = arith.mulf %26, %26 : vector<8x32xf32>
      %cst_26 = arith.constant dense<0.000000e+00> : vector<8xf32>
      %28 = vector.multi_reduction <add>, %27, %cst_26 [1] : vector<8x32xf32> to vector<8xf32>
      %29 = vector.shape_cast %28 : vector<8xf32> to vector<8x1xf32>
      %30 = math.rsqrt %29 : vector<8x1xf32>
      %31 = vector.broadcast %30 : vector<8x1xf32> to vector<8x32xf32>
      %32 = arith.mulf %26, %31 : vector<8x32xf32>
      %c0_27 = arith.constant 0 : index
      %c0_28 = arith.constant 0 : index
      %33 = vector.load %arg12[%c0_27, %c0_28] : memref<8x32xf32, #tpu.memory_space<vmem>>, vector<8x32xf32>
      tpu.vector_store %arg12[%c0_27, %c0_28], %32 {strides = array<i32>} : memref<8x32xf32, #tpu.memory_space<vmem>>, vector<8x32xf32>,
      %c0_29 = arith.constant 0 : index
      %c0_30 = arith.constant 0 : index
      %34 = vector.load %arg4[%c0_29, %c0_30] : memref<1024x32xf32, #tpu.memory_space<vmem>>, vector<1024x32xf32>
      %cst_31 = arith.constant dense<0.000000e+00> : vector<8x32xf32>
      %35 = tpu.matmul %21, %34, %cst_31 {dimension_numbers = #tpu.dot_dimension_numbers<[1], [0], [0], [1], [0, 0, 1, 1], [], []>} : vector<8x1024xf32>, vector<1024x32xf32>, vector<8x32xf32> -> vector<8x32xf32>
      %c0_32 = arith.constant 0 : index
      %c0_33 = arith.constant 0 : index
      %36 = vector.load %arg5[%c0_32, %c0_33] : memref<1x32xf32, #tpu.memory_space<vmem>>, vector<1x32xf32>
      %37 = vector.broadcast %36 : vector<1x32xf32> to vector<8x32xf32>
      %38 = arith.addf %35, %37 : vector<8x32xf32>
      %39 = arith.mulf %38, %38 : vector<8x32xf32>
      %cst_34 = arith.constant dense<0.000000e+00> : vector<8xf32>
      %40 = vector.multi_reduction <add>, %39, %cst_34 [1] : vector<8x32xf32> to vector<8xf32>
      %41 = vector.shape_cast %40 : vector<8xf32> to vector<8x1xf32>
      %42 = math.rsqrt %41 : vector<8x1xf32>
      %43 = vector.broadcast %42 : vector<8x1xf32> to vector<8x32xf32>
      %44 = arith.mulf %38, %43 : vector<8x32xf32>
      %c0_35 = arith.constant 0 : index
      %c0_36 = arith.constant 0 : index
      %45 = vector.load %arg13[%c0_35, %c0_36] : memref<8x32xf32, #tpu.memory_space<vmem>>, vector<8x32xf32>
      tpu.vector_store %arg13[%c0_35, %c0_36], %44 {strides = array<i32>} : memref<8x32xf32, #tpu.memory_space<vmem>>, vector<8x32xf32>,
    } else {
    }
    %c0 = arith.constant 0 : index
    %c0_1 = arith.constant 0 : index
    %3 = vector.load %arg12[%c0, %c0_1] : memref<8x32xf32, #tpu.memory_space<vmem>>, vector<8x32xf32>
    %c0_2 = arith.constant 0 : index
    %c0_3 = arith.constant 0 : index
    %4 = vector.load %arg6[%c0_2, %c0_3] : memref<32x128xf32, #tpu.memory_space<vmem>>, vector<32x128xf32>
    %cst = arith.constant dense<0.000000e+00> : vector<8x128xf32>
    %5 = tpu.matmul %3, %4, %cst {dimension_numbers = #tpu.dot_dimension_numbers<[1], [0], [0], [1], [0, 0, 1, 1], [], []>} : vector<8x32xf32>, vector<32x128xf32>, vector<8x128xf32> -> vector<8x128xf32>
    %c0_4 = arith.constant 0 : index
    %c0_5 = arith.constant 0 : index
    %6 = vector.load %arg7[%c0_4, %c0_5] : memref<1x128xf32, #tpu.memory_space<vmem>>, vector<1x128xf32>
    %7 = vector.broadcast %6 : vector<1x128xf32> to vector<8x128xf32>
    %8 = arith.addf %5, %7 : vector<8x128xf32>
    %cst_6 = arith.constant 0.000000e+00 : f32
    %9 = vector.broadcast %cst_6 : f32 to vector<8x128xf32>
    %10 = arith.maximumf %8, %9 : vector<8x128xf32>
    %c0_7 = arith.constant 0 : index
    %c0_8 = arith.constant 0 : index
    %11 = vector.load %arg10[%c0_7, %c0_8] : memref<8x128xf32, #tpu.memory_space<vmem>>, vector<8x128xf32>
    tpu.vector_store %arg10[%c0_7, %c0_8], %10 {strides = array<i32>} : memref<8x128xf32, #tpu.memory_space<vmem>>, vector<8x128xf32>,
    %c0_9 = arith.constant 0 : index
    %c0_10 = arith.constant 0 : index
    %12 = vector.load %arg13[%c0_9, %c0_10] : memref<8x32xf32, #tpu.memory_space<vmem>>, vector<8x32xf32>
    %c0_11 = arith.constant 0 : index
    %c0_12 = arith.constant 0 : index
    %13 = vector.load %arg8[%c0_11, %c0_12] : memref<32x128xf32, #tpu.memory_space<vmem>>, vector<32x128xf32>
    %cst_13 = arith.constant dense<0.000000e+00> : vector<8x128xf32>
    %14 = tpu.matmul %12, %13, %cst_13 {dimension_numbers = #tpu.dot_dimension_numbers<[1], [0], [0], [1], [0, 0, 1, 1], [], []>} : vector<8x32xf32>, vector<32x128xf32>, vector<8x128xf32> -> vector<8x128xf32>
    %c0_14 = arith.constant 0 : index
    %c0_15 = arith.constant 0 : index
    %15 = vector.load %arg9[%c0_14, %c0_15] : memref<1x128xf32, #tpu.memory_space<vmem>>, vector<1x128xf32>
    %16 = vector.broadcast %15 : vector<1x128xf32> to vector<8x128xf32>
    %17 = arith.addf %14, %16 : vector<8x128xf32>
    %cst_16 = arith.constant 0.000000e+00 : f32
    %18 = vector.broadcast %cst_16 : f32 to vector<8x128xf32>
    %19 = arith.maximumf %17, %18 : vector<8x128xf32>
    %c0_17 = arith.constant 0 : index
    %c0_18 = arith.constant 0 : index
    %20 = vector.load %arg11[%c0_17, %c0_18] : memref<8x128xf32, #tpu.memory_space<vmem>>, vector<8x128xf32>
    tpu.vector_store %arg11[%c0_17, %c0_18], %19 {strides = array<i32>} : memref<8x128xf32, #tpu.memory_space<vmem>>, vector<8x128xf32>,
    return
  }
  func.func @transform_0(%arg0: i32) -> (i32, i32) {
    %c0_i32 = arith.constant 0 : i32
    %c0_i32_0 = arith.constant 0 : i32
    %c0_i32_1 = arith.constant 0 : i32
    return %c0_i32, %c0_i32_0 : i32, i32
  }
  func.func @transform_1(%arg0: i32) -> (i32, i32) {
    %c0_i32 = arith.constant 0 : i32
    %c0_i32_0 = arith.constant 0 : i32
    %c0_i32_1 = arith.constant 0 : i32
    return %c0_i32, %c0_i32_0 : i32, i32
  }
  func.func @transform_2(%arg0: i32) -> (i32, i32) {
    %c0_i32 = arith.constant 0 : i32
    %c0_i32_0 = arith.constant 0 : i32
    %c0_i32_1 = arith.constant 0 : i32
    return %c0_i32, %c0_i32_0 : i32, i32
  }
  func.func @transform_3(%arg0: i32) -> (i32, i32) {
    %c0_i32 = arith.constant 0 : i32
    %c0_i32_0 = arith.constant 0 : i32
    %c0_i32_1 = arith.constant 0 : i32
    return %c0_i32, %c0_i32_0 : i32, i32
  }
  func.func @transform_4(%arg0: i32) -> (i32, i32) {
    %c0_i32 = arith.constant 0 : i32
    %c0_i32_0 = arith.constant 0 : i32
    %c0_i32_1 = arith.constant 0 : i32
    return %c0_i32, %c0_i32_0 : i32, i32
  }
  func.func @transform_5(%arg0: i32) -> (i32, i32) {
    %c0_i32 = arith.constant 0 : i32
    %c0_i32_0 = arith.constant 0 : i32
    return %c0_i32, %arg0 : i32, i32
  }
  func.func @transform_6(%arg0: i32) -> (i32, i32) {
    %c0_i32 = arith.constant 0 : i32
    %c0_i32_0 = arith.constant 0 : i32
    return %c0_i32, %arg0 : i32, i32
  }
  func.func @transform_7(%arg0: i32) -> (i32, i32) {
    %c0_i32 = arith.constant 0 : i32
    %c0_i32_0 = arith.constant 0 : i32
    return %c0_i32, %arg0 : i32, i32
  }
  func.func @transform_8(%arg0: i32) -> (i32, i32) {
    %c0_i32 = arith.constant 0 : i32
    %c0_i32_0 = arith.constant 0 : i32
    return %c0_i32, %arg0 : i32, i32
  }
  func.func @transform_9(%arg0: i32) -> (i32, i32) {
    %c0_i32 = arith.constant 0 : i32
    %c0_i32_0 = arith.constant 0 : i32
    return %c0_i32, %arg0 : i32, i32
  }
  func.func @transform_10(%arg0: i32) -> (i32, i32) {
    %c0_i32 = arith.constant 0 : i32
    %c0_i32_0 = arith.constant 0 : i32
    return %c0_i32, %arg0 : i32, i32
  }
}

</mosaic_0001>

<bundles_post_ra>
// kernel: tpu_custom_call.1
= control target key start
LH: loop header
LB: loop body
LE: loop exit
PB: predicated region body
PF: predicated region fallthrough
CT: control target
= control target key end

     0   :  { %16 = vsyncpa [#allocation5], 0  ;;  %s2689_s0 = inlined_call_operand.vmem [shape: f32[8,1024], index: 0, kind: input, shape index: {}]   ;;  %s2690_s1 = inlined_call_operand.vmem [shape: f32[1024,32], index: 1, kind: input, shape index: {}]   ;;  %s2691_s2 = inlined_call_operand.vmem [shape: f32[1,32], index: 2, kind: input, shape index: {}]   ;;  %s2692_s3 = inlined_call_operand.vmem [shape: f32[1024,32], index: 3, kind: input, shape index: {}]   ;;  %s2693_s4 = inlined_call_operand.vmem [shape: f32[1,32], index: 4, kind: input, shape index: {}]   ;;  %s2694_s5 = inlined_call_operand.vmem [shape: f32[32,128], index: 5, kind: input, shape index: {}]   ;;  %s2695_s6 = inlined_call_operand.vmem [shape: f32[1,128], index: 6, kind: input, shape index: {}]   ;;  %s2696_s7 = inlined_call_operand.vmem [shape: f32[32,128], index: 7, kind: input, shape index: {}]   ;;  %s2697_s8 = inlined_call_operand.vmem [shape: f32[1,128], index: 8, kind: input, shape index: {}]   ;;  %s2698_s9 = inlined_call_operand.hbm [shape: f32[8,128], index: 9, kind: output, shape index: {0}]   ;;  %s2699_s10 = inlined_call_operand.hbm [shape: f32[8,128], index: 10, kind: output, shape index: {1}]  }
   0x1   :  { %v64_v0 = vld [vmem:[%s2690_s1 + $0x80] sm:$0xff]  ;;  %v65_v1 = vld [vmem:[%s2690_s1 + $0x88] sm:$0xff]  ;;  %v66_v11 = vld [vmem:[%s2690_s1 + $0x90] sm:$0xff] }
   0x2   :  { %v48_v2 = vld [vmem:[%s2690_s1] sm:$0xff]  ;;  %v1414_v3 = vpack.c.bf16 %v65_v1, %v64_v0  ;;  %v49_v4 = vld [vmem:[%s2690_s1 + $0x8] sm:$0xff]  ;;  %v67_v13 = vld [vmem:[%s2690_s1 + $0x98] sm:$0xff] }
   0x3   :  { %v96_v5 = vld [vmem:[%s2690_s1 + $0x180] sm:$0xff]  ;;  %v97_v6 = vld [vmem:[%s2690_s1 + $0x188] sm:$0xff]  ;;  %v1416_v7 = vpack.c.bf16 %v49_v4, %v48_v2  ;;  %v50_v14 = vld [vmem:[%s2690_s1 + $0x10] sm:$0xff]  ;;  %v1418_v16 = vpack.c.bf16 %v67_v13, %v66_v11 }
   0x4   :  { %v1446_v8 = vpack.c.bf16 %v97_v6, %v96_v5  ;;  %v80_v9 = vld [vmem:[%s2690_s1 + $0x100] sm:$0xff]  ;;  %v81_v10 = vld [vmem:[%s2690_s1 + $0x108] sm:$0xff]  ;;  %1415 = vmatprep.subr.bf16.mxu0 %v1414_v3  ;;  %v51_v15 = vld [vmem:[%s2690_s1 + $0x18] sm:$0xff] }
   0x5   :  { %v1448_v12 = vpack.c.bf16 %v81_v10, %v80_v9  ;;  %1417 = vmatpush3.bf16.msra.mxu0 %v1416_v7  ;;  %v1420_v17 = vpack.c.bf16 %v51_v15, %v50_v14  ;;  %v98_v18 = vld [vmem:[%s2690_s1 + $0x190] sm:$0xff]  ;;  %v99_v19 = vld [vmem:[%s2690_s1 + $0x198] sm:$0xff]  ;;  %v68_v23 = vld [vmem:[%s2690_s1 + $0xa0] sm:$0xff] }
   0x6   :  { %1447 = vmatprep.subr.bf16.mxu1 %v1446_v8  ;;  %v82_v20 = vld [vmem:[%s2690_s1 + $0x110] sm:$0xff]  ;;  %v1450_v21 = vpack.c.bf16 %v99_v19, %v98_v18  ;;  %v83_v22 = vld [vmem:[%s2690_s1 + $0x118] sm:$0xff]  ;;  %v69_v24 = vld [vmem:[%s2690_s1 + $0xa8] sm:$0xff]  ;;  %1419 = vmatprep.subr.bf16.mxu0 %v1418_v16 }
   0x7   :  { %1449 = vmatpush3.bf16.msra.mxu1 %v1448_v12  ;;  %v1452_v25 = vpack.c.bf16 %v83_v22, %v82_v20  ;;  %v1422_v26 = vpack.c.bf16 %v69_v24, %v68_v23  ;;  %v52_v27 = vld [vmem:[%s2690_s1 + $0x20] sm:$0xff]  ;;  %v53_v28 = vld [vmem:[%s2690_s1 + $0x28] sm:$0xff]  ;;  %v70_v35 = vld [vmem:[%s2690_s1 + $0xb0] sm:$0xff] }
   0x8   :  { %v100_v29 = vld [vmem:[%s2690_s1 + $0x1a0] sm:$0xff]  ;;  %1451 = vmatprep.subr.bf16.mxu1 %v1450_v21  ;;  %v101_v30 = vld [vmem:[%s2690_s1 + $0x1a8] sm:$0xff]  ;;  %v1424_v33 = vpack.c.bf16 %v53_v28, %v52_v27  ;;  %v71_v36 = vld [vmem:[%s2690_s1 + $0xb8] sm:$0xff] }
   0x9   :  { %v84_v31 = vld [vmem:[%s2690_s1 + $0x120] sm:$0xff]  ;;  %v85_v32 = vld [vmem:[%s2690_s1 + $0x128] sm:$0xff]  ;;  %1421 = vmatpush3.bf16.msra.mxu0 %v1420_v17  ;;  %v1454_v34 = vpack.c.bf16 %v101_v30, %v100_v29  ;;  %v54_v37 = vld [vmem:[%s2690_s1 + $0x30] sm:$0xff]  ;;  %v1426_v39 = vpack.c.bf16 %v71_v36, %v70_v35 }
   0xa   :  { %1423 = vmatprep.subr.bf16.mxu0 %v1422_v26  ;;  %v1456_v38 = vpack.c.bf16 %v85_v32, %v84_v31  ;;  %v55_v40 = vld [vmem:[%s2690_s1 + $0x38] sm:$0xff]  ;;  %v102_v41 = vld [vmem:[%s2690_s1 + $0x1b0] sm:$0xff]  ;;  %v72_v46 = vld [vmem:[%s2690_s1 + $0xc0] sm:$0xff] }
   0xb   :  { %1453 = vmatpush3.bf16.msra.mxu1 %v1452_v25  ;;  %v103_v42 = vld [vmem:[%s2690_s1 + $0x1b8] sm:$0xff]  ;;  %v86_v44 = vld [vmem:[%s2690_s1 + $0x130] sm:$0xff]  ;;  %v73_v47 = vld [vmem:[%s2690_s1 + $0xc8] sm:$0xff]  ;;  %v1428_v48 = vpack.c.bf16 %v55_v40, %v54_v37 }
   0xc   :  { %1455 = vmatprep.subr.bf16.mxu1 %v1454_v34  ;;  %v1458_v43 = vpack.c.bf16 %v103_v42, %v102_v41  ;;  %v87_v45 = vld [vmem:[%s2690_s1 + $0x138] sm:$0xff]  ;;  %v104_v49 = vld [vmem:[%s2690_s1 + $0x1c0] sm:$0xff]  ;;  %v105_v50 = vld [vmem:[%s2690_s1 + $0x1c8] sm:$0xff]  ;;  %v1430_v52 = vpack.c.bf16 %v73_v47, %v72_v46 }
   0xd   :  { %1425 = vmatpush3.bf16.msra.mxu0 %v1424_v33  ;;  %v1460_v51 = vpack.c.bf16 %v87_v45, %v86_v44  ;;  %v56_v53 = vld [vmem:[%s2690_s1 + $0x40] sm:$0xff]  ;;  %v57_v54 = vld [vmem:[%s2690_s1 + $0x48] sm:$0xff]  ;;  %v1462_v56 = vpack.c.bf16 %v105_v50, %v104_v49  ;;  %v74_v58 = vld [vmem:[%s2690_s1 + $0xd0] sm:$0xff] }
   0xe   :  { %1427 = vmatprep.subr.bf16.mxu0 %v1426_v39  ;;  %v88_v55 = vld [vmem:[%s2690_s1 + $0x140] sm:$0xff]  ;;  %v89_v57 = vld [vmem:[%s2690_s1 + $0x148] sm:$0xff]  ;;  %v75_v59 = vld [vmem:[%s2690_s1 + $0xd8] sm:$0xff]  ;;  %v1432_v62 = vpack.c.bf16 %v57_v54, %v56_v53 }
   0xf   :  { %1457 = vmatpush3.bf16.msra.mxu1 %v1456_v38  ;;  %v106_v60 = vld [vmem:[%s2690_s1 + $0x1d0] sm:$0xff]  ;;  %v107_v61 = vld [vmem:[%s2690_s1 + $0x1d8] sm:$0xff]  ;;  %v1464_v63 = vpack.c.bf16 %v89_v57, %v88_v55  ;;  %v1434_v0 = vpack.c.bf16 %v75_v59, %v74_v58  ;;  %v76_v6 = vld [vmem:[%s2690_s1 + $0xe0] sm:$0xff] }
  0x10   :  { %1459 = vmatprep.subr.bf16.mxu1 %v1458_v43  ;;  %v58_v1 = vld [vmem:[%s2690_s1 + $0x50] sm:$0xff]  ;;  %v59_v2 = vld [vmem:[%s2690_s1 + $0x58] sm:$0xff]  ;;  %v1466_v4 = vpack.c.bf16 %v107_v61, %v106_v60  ;;  %v77_v7 = vld [vmem:[%s2690_s1 + $0xe8] sm:$0xff] }
  0x11   :  { %1429 = vmatpush3.bf16.msra.mxu0 %v1428_v48  ;;  %v90_v3 = vld [vmem:[%s2690_s1 + $0x150] sm:$0xff]  ;;  %v91_v5 = vld [vmem:[%s2690_s1 + $0x158] sm:$0xff]  ;;  %v108_v8 = vld [vmem:[%s2690_s1 + $0x1e0] sm:$0xff]  ;;  %v1436_v10 = vpack.c.bf16 %v59_v2, %v58_v1  ;;  %v1438_v14 = vpack.c.bf16 %v77_v7, %v76_v6 }
  0x12   :  { %1431 = vmatprep.subr.bf16.mxu0 %v1430_v52  ;;  %v109_v9 = vld [vmem:[%s2690_s1 + $0x1e8] sm:$0xff]  ;;  %v60_v11 = vld [vmem:[%s2690_s1 + $0x60] sm:$0xff]  ;;  %v1468_v13 = vpack.c.bf16 %v91_v5, %v90_v3  ;;  %v78_v19 = vld [vmem:[%s2690_s1 + $0xf0] sm:$0xff] }
  0x13   :  { %1461 = vmatpush3.bf16.msra.mxu1 %v1460_v51  ;;  %v61_v12 = vld [vmem:[%s2690_s1 + $0x68] sm:$0xff]  ;;  %v92_v15 = vld [vmem:[%s2690_s1 + $0x160] sm:$0xff]  ;;  %v1470_v18 = vpack.c.bf16 %v109_v9, %v108_v8  ;;  %v79_v20 = vld [vmem:[%s2690_s1 + $0xf8] sm:$0xff] }
  0x14   :  { %1463 = vmatprep.subr.bf16.mxu1 %v1462_v56  ;;  %v93_v16 = vld [vmem:[%s2690_s1 + $0x168] sm:$0xff]  ;;  %v1982_v21 = vld [vmem:[%s2689_s0 + $0x18] sm:$0xff]  ;;  %v110_v22 = vld [vmem:[%s2690_s1 + $0x1f0] sm:$0xff]  ;;  %v1440_v24 = vpack.c.bf16 %v61_v12, %v60_v11  ;;  %v1442_v26 = vpack.c.bf16 %v79_v20, %v78_v19 }
  0x15   :  { %1433 = vmatpush3.bf16.msra.mxu0 %v1432_v62  ;;  %v1970_v17 = vld [vmem:[%s2689_s0 + $0x8] sm:$0xff]  ;;  %v111_v23 = vld [vmem:[%s2690_s1 + $0x1f8] sm:$0xff]  ;;  %317 = vmatprep.mubr.f32.mxu1 %v1982_v21  ;;  %v1472_v25 = vpack.c.bf16 %v93_v16, %v92_v15  ;;  %v62_v27 = vld [vmem:[%s2690_s1 + $0x70] sm:$0xff] }
  0x16   :  { %1435 = vmatprep.subr.bf16.mxu0 %v1434_v0  ;;  %247 = vmatprep.mubr.f32.mxu0 %v1970_v17  ;;  %v63_v28 = vld [vmem:[%s2690_s1 + $0x78] sm:$0xff]  ;;  %v94_v29 = vld [vmem:[%s2690_s1 + $0x170] sm:$0xff]  ;;  %v1474_v30 = vpack.c.bf16 %v111_v23, %v110_v22  ;;  %v128_v32 = vld [vmem:[%s2690_s1 + $0x280] sm:$0xff] }
  0x17   :  { %1465 = vmatpush3.bf16.msra.mxu1 %v1464_v63  ;;  %v95_v31 = vld [vmem:[%s2690_s1 + $0x178] sm:$0xff]  ;;  %v129_v33 = vld [vmem:[%s2690_s1 + $0x288] sm:$0xff]  ;;  %v160_v34 = vld [vmem:[%s2690_s1 + $0x380] sm:$0xff]  ;;  %v1444_v36 = vpack.c.bf16 %v63_v28, %v62_v27 }
  0x18   :  { %1467 = vmatprep.subr.bf16.mxu1 %v1466_v4  ;;  %v161_v35 = vld [vmem:[%s2690_s1 + $0x388] sm:$0xff]  ;;  %v1476_v37 = vpack.c.bf16 %v95_v31, %v94_v29  ;;  %v1478_v38 = vpack.c.bf16 %v129_v33, %v128_v32  ;;  %v112_v39 = vld [vmem:[%s2690_s1 + $0x200] sm:$0xff]  ;;  %v130_v44 = vld [vmem:[%s2690_s1 + $0x290] sm:$0xff] }
  0x19   :  { %1437 = vmatpush3.bf16.msra.mxu0 %v1436_v10  ;;  %v113_v40 = vld [vmem:[%s2690_s1 + $0x208] sm:$0xff]  ;;  %v144_v41 = vld [vmem:[%s2690_s1 + $0x300] sm:$0xff]  ;;  %v1510_v42 = vpack.c.bf16 %v161_v35, %v160_v34  ;;  %v131_v45 = vld [vmem:[%s2690_s1 + $0x298] sm:$0xff] }
  0x1a   :  { %1439 = vmatprep.subr.bf16.mxu0 %v1438_v14  ;;  %v145_v43 = vld [vmem:[%s2690_s1 + $0x308] sm:$0xff]  ;;  %v162_v46 = vld [vmem:[%s2690_s1 + $0x390] sm:$0xff]  ;;  %v163_v47 = vld [vmem:[%s2690_s1 + $0x398] sm:$0xff]  ;;  %v1480_v49 = vpack.c.bf16 %v113_v40, %v112_v39  ;;  %v1482_v52 = vpack.c.bf16 %v131_v45, %v130_v44 }
  0x1b   :  { %1469 = vmatpush3.bf16.msra.mxu1 %v1468_v13  ;;  %v2042_v48 = vld [vmem:[%s2689_s0] sm:$0xff]  ;;  %v2047_v50 = vld [vmem:[%s2689_s0 + $0x10] sm:$0xff]  ;;  %v1512_v51 = vpack.c.bf16 %v145_v43, %v144_v41  ;;  %v115_v54 = vld [vmem:[%s2690_s1 + $0x218] sm:$0xff]  ;;  %v1514_v56 = vpack.c.bf16 %v163_v47, %v162_v46 }
  0x1c   :  { %1471 = vmatprep.subr.bf16.mxu1 %v1470_v18  ;;  %v114_v53 = vld [vmem:[%s2690_s1 + $0x210] sm:$0xff]  ;;  %v147_v57 = vld [vmem:[%s2690_s1 + $0x318] sm:$0xff]  ;;  %v132_v58 = vld [vmem:[%s2690_s1 + $0x2a0] sm:$0xff] }
  0x1d   :  { %1441 = vmatpush3.bf16.msra.mxu0 %v1440_v24  ;;  %v146_v55 = vld [vmem:[%s2690_s1 + $0x310] sm:$0xff]  ;;  %v133_v59 = vld [vmem:[%s2690_s1 + $0x2a8] sm:$0xff]  ;;  %v164_v60 = vld [vmem:[%s2690_s1 + $0x3a0] sm:$0xff]  ;;  %v1484_v62 = vpack.c.bf16 %v115_v54, %v114_v53 }
  0x1e   :  { %1443 = vmatprep.subr.bf16.mxu0 %v1442_v26  ;;  %v165_v61 = vld [vmem:[%s2690_s1 + $0x3a8] sm:$0xff]  ;;  %v1516_v63 = vpack.c.bf16 %v147_v57, %v146_v55  ;;  %v1486_v0 = vpack.c.bf16 %v133_v59, %v132_v58  ;;  %v116_v1 = vld [vmem:[%s2690_s1 + $0x220] sm:$0xff]  ;;  %v134_v6 = vld [vmem:[%s2690_s1 + $0x2b0] sm:$0xff] }
  0x1f   :  { %1473 = vmatpush3.bf16.msra.mxu1 %v1472_v25  ;;  %v117_v2 = vld [vmem:[%s2690_s1 + $0x228] sm:$0xff]  ;;  %v148_v3 = vld [vmem:[%s2690_s1 + $0x320] sm:$0xff]  ;;  %v1518_v4 = vpack.c.bf16 %v165_v61, %v164_v60  ;;  %v135_v7 = vld [vmem:[%s2690_s1 + $0x2b8] sm:$0xff] }
  0x20   :  { %1475 = vmatprep.subr.bf16.mxu1 %v1474_v30  ;;  %v149_v5 = vld [vmem:[%s2690_s1 + $0x328] sm:$0xff]  ;;  %v166_v8 = vld [vmem:[%s2690_s1 + $0x3b0] sm:$0xff]  ;;  %v167_v9 = vld [vmem:[%s2690_s1 + $0x3b8] sm:$0xff]  ;;  %v1488_v10 = vpack.c.bf16 %v117_v2, %v116_v1  ;;  %v1490_v12 = vpack.c.bf16 %v135_v7, %v134_v6 }
  0x21   :  { %1445 = vmatpush3.bf16.msra.mxu0 %v1444_v36  ;;  %v1520_v11 = vpack.c.bf16 %v149_v5, %v148_v3  ;;  %v118_v13 = vld [vmem:[%s2690_s1 + $0x230] sm:$0xff]  ;;  %v119_v14 = vld [vmem:[%s2690_s1 + $0x238] sm:$0xff]  ;;  %v1522_v16 = vpack.c.bf16 %v167_v9, %v166_v8  ;;  %v136_v19 = vld [vmem:[%s2690_s1 + $0x2c0] sm:$0xff] }
  0x22   :  { %1479 = vmatprep.subr.bf16.mxu0 %v1478_v38  ;;  %v150_v15 = vld [vmem:[%s2690_s1 + $0x330] sm:$0xff]  ;;  %v151_v18 = vld [vmem:[%s2690_s1 + $0x338] sm:$0xff]  ;;  %v137_v20 = vld [vmem:[%s2690_s1 + $0x2c8] sm:$0xff]  ;;  %v1492_v24 = vpack.c.bf16 %v119_v14, %v118_v13 }
  0x23   :  { %1477 = vmatpush3.bf16.msra.mxu1 %v1476_v37  ;;  %v168_v22 = vld [vmem:[%s2690_s1 + $0x3c0] sm:$0xff]  ;;  %v169_v23 = vld [vmem:[%s2690_s1 + $0x3c8] sm:$0xff]  ;;  %v1524_v27 = vpack.c.bf16 %v151_v18, %v150_v15  ;;  %v1494_v28 = vpack.c.bf16 %v137_v20, %v136_v19  ;;  %v2140_v31 = vld [vmem:[%s2689_s0 + $0x38] sm:$0xff] }
  0x24   :  { %1511 = vmatprep.subr.bf16.mxu1 %v1510_v42  ;;  %248 = vmatmul.mubr.f32.vlgmr.msra.gmra.mrb[0].mxu0 %v2042_v48  ;;  %v120_v25 = vld [vmem:[%s2690_s1 + $0x240] sm:$0xff]  ;;  %v2129_v26 = vld [vmem:[%s2689_s0 + $0x28] sm:$0xff]  ;;  %v1526_v32 = vpack.c.bf16 %v169_v23, %v168_v22  ;;  %v138_v34 = vld [vmem:[%s2690_s1 + $0x2d0] sm:$0xff] }
  0x25   :  { %1481 = vmatpush3.bf16.msra.mxu0 %v1480_v49  ;;  %v121_v29 = vld [vmem:[%s2690_s1 + $0x248] sm:$0xff]  ;;  %v152_v30 = vld [vmem:[%s2690_s1 + $0x340] sm:$0xff]  ;;  %v139_v35 = vld [vmem:[%s2690_s1 + $0x2d8] sm:$0xff]  ;;  %387 = vmatprep.mubr.f32.mxu0 %v2129_v26 }
  0x26   :  { %318 = vmatmul.mubr.f32.vlgmr.msra.gmra.mrb[0].mxu1 %v2047_v50  ;;  %1483 = vmatprep.subr.bf16.mxu0 %v1482_v52  ;;  %v153_v33 = vld [vmem:[%s2690_s1 + $0x348] sm:$0xff]  ;;  %v170_v36 = vld [vmem:[%s2690_s1 + $0x3d0] sm:$0xff]  ;;  %v171_v37 = vld [vmem:[%s2690_s1 + $0x3d8] sm:$0xff]  ;;  %v1496_v38 = vpack.c.bf16 %v121_v29, %v120_v25  ;;  %v1498_v40 = vpack.c.bf16 %v139_v35, %v138_v34 }
  0x27   :  { %1513 = vmatpush3.bf16.msra.mxu1 %v1512_v51  ;;  %457 = vmatprep.mubr.f32.mxu1 %v2140_v31  ;;  %v1528_v39 = vpack.c.bf16 %v153_v33, %v152_v30  ;;  %v122_v41 = vld [vmem:[%s2690_s1 + $0x250] sm:$0xff]  ;;  %v123_v42 = vld [vmem:[%s2690_s1 + $0x258] sm:$0xff]  ;;  %v1530_v44 = vpack.c.bf16 %v171_v37, %v170_v36  ;;  %v140_v46 = vld [vmem:[%s2690_s1 + $0x2e0] sm:$0xff] }
  0x28   :  { %1515 = vmatprep.subr.bf16.mxu1 %v1514_v56  ;;  %v154_v43 = vld [vmem:[%s2690_s1 + $0x350] sm:$0xff]  ;;  %v155_v45 = vld [vmem:[%s2690_s1 + $0x358] sm:$0xff]  ;;  %v141_v47 = vld [vmem:[%s2690_s1 + $0x2e8] sm:$0xff]  ;;  %v1500_v52 = vpack.c.bf16 %v123_v42, %v122_v41 }
  0x29   :  { %1485 = vmatpush3.bf16.msra.mxu0 %v1484_v62  ;;  %v172_v49 = vld [vmem:[%s2690_s1 + $0x3e0] sm:$0xff]  ;;  %v173_v51 = vld [vmem:[%s2690_s1 + $0x3e8] sm:$0xff]  ;;  %v1532_v53 = vpack.c.bf16 %v155_v45, %v154_v43  ;;  %v1502_v54 = vpack.c.bf16 %v141_v47, %v140_v46  ;;  %v142_v60 = vld [vmem:[%s2690_s1 + $0x2f0] sm:$0xff] }
  0x2a   :  { %1487 = vmatprep.subr.bf16.mxu0 %v1486_v0  ;;  %v124_v55 = vld [vmem:[%s2690_s1 + $0x260] sm:$0xff]  ;;  %v125_v56 = vld [vmem:[%s2690_s1 + $0x268] sm:$0xff]  ;;  %v1534_v58 = vpack.c.bf16 %v173_v51, %v172_v49  ;;  %v143_v61 = vld [vmem:[%s2690_s1 + $0x2f8] sm:$0xff] }
  0x2b   :  { %1517 = vmatpush3.bf16.msra.mxu1 %v1516_v63  ;;  %v156_v57 = vld [vmem:[%s2690_s1 + $0x360] sm:$0xff]  ;;  %v157_v59 = vld [vmem:[%s2690_s1 + $0x368] sm:$0xff]  ;;  %v174_v62 = vld [vmem:[%s2690_s1 + $0x3f0] sm:$0xff]  ;;  %v1504_v0 = vpack.c.bf16 %v125_v56, %v124_v55  ;;  %v1506_v2 = vpack.c.bf16 %v143_v61, %v142_v60 }
  0x2c   :  { %1519 = vmatprep.subr.bf16.mxu1 %v1518_v4  ;;  %v175_v63 = vld [vmem:[%s2690_s1 + $0x3f8] sm:$0xff]  ;;  %v1536_v1 = vpack.c.bf16 %v157_v59, %v156_v57  ;;  %v126_v3 = vld [vmem:[%s2690_s1 + $0x270] sm:$0xff]  ;;  %v487_v8 = vld [vmem:[%s2692_s3 + $0x80] sm:$0xff] }
  0x2d   :  { %1489 = vmatpush3.bf16.msra.mxu0 %v1488_v10  ;;  %v127_v4 = vld [vmem:[%s2690_s1 + $0x278] sm:$0xff]  ;;  %v158_v5 = vld [vmem:[%s2690_s1 + $0x370] sm:$0xff]  ;;  %v1538_v6 = vpack.c.bf16 %v175_v63, %v174_v62  ;;  %v488_v9 = vld [vmem:[%s2692_s3 + $0x88] sm:$0xff] }
  0x2e   :  { %1491 = vmatprep.subr.bf16.mxu0 %v1490_v12  ;;  %v159_v7 = vld [vmem:[%s2690_s1 + $0x378] sm:$0xff]  ;;  %v519_v10 = vld [vmem:[%s2692_s3 + $0x180] sm:$0xff]  ;;  %v1508_v12 = vpack.c.bf16 %v127_v4, %v126_v3  ;;  %v1542_v14 = vpack.c.bf16 %v488_v9, %v487_v8  ;;  %v504_v20 = vld [vmem:[%s2692_s3 + $0x108] sm:$0xff] }
  0x2f   :  { %1521 = vmatpush3.bf16.msra.mxu1 %v1520_v11  ;;  %v520_v11 = vld [vmem:[%s2692_s3 + $0x188] sm:$0xff]  ;;  %v1540_v13 = vpack.c.bf16 %v159_v7, %v158_v5  ;;  %v471_v15 = vld [vmem:[%s2692_s3] sm:$0xff]  ;;  %v489_v22 = vld [vmem:[%s2692_s3 + $0x90] sm:$0xff] }
  0x30   :  { %1523 = vmatprep.subr.bf16.mxu1 %v1522_v16  ;;  %v472_v16 = vld [vmem:[%s2692_s3 + $0x8] sm:$0xff]  ;;  %v503_v18 = vld [vmem:[%s2692_s3 + $0x100] sm:$0xff]  ;;  %v1574_v19 = vpack.c.bf16 %v520_v11, %v519_v10  ;;  %v490_v23 = vld [vmem:[%s2692_s3 + $0x98] sm:$0xff] }
  0x31   :  { %1493 = vmatpush3.bf16.msra.mxu0 %v1492_v24  ;;  %v521_v24 = vld [vmem:[%s2692_s3 + $0x190] sm:$0xff]  ;;  %v522_v25 = vld [vmem:[%s2692_s3 + $0x198] sm:$0xff]  ;;  %v1576_v30 = vpack.c.bf16 %v504_v20, %v503_v18  ;;  %v524_v41 = vld [vmem:[%s2692_s3 + $0x1a8] sm:$0xff] }
  0x32   :  { %1495 = vmatprep.subr.bf16.mxu0 %v1494_v28  ;;  %v1544_v28 = vpack.c.bf16 %v472_v16, %v471_v15  ;;  %v2263_v29 = vld [vmem:[%s2689_s0 + $0x30] sm:$0xff]  ;;  %v474_v34 = vld [vmem:[%s2692_s3 + $0x18] sm:$0xff]  ;;  %v1578_v36 = vpack.c.bf16 %v522_v25, %v521_v24  ;;  %v475_v45 = vld [vmem:[%s2692_s3 + $0x20] sm:$0xff] }
  0x33   :  { %1525 = vmatpush3.bf16.msra.mxu1 %v1524_v27  ;;  %v2258_v27 = vld [vmem:[%s2689_s0 + $0x20] sm:$0xff]  ;;  %v473_v33 = vld [vmem:[%s2692_s3 + $0x10] sm:$0xff]  ;;  %v506_v37 = vld [vmem:[%s2692_s3 + $0x118] sm:$0xff] }
  0x34   :  { %1527 = vmatprep.subr.bf16.mxu1 %v1526_v32  ;;  %v1546_v32 = vpack.c.bf16 %v490_v23, %v489_v22  ;;  %v505_v35 = vld [vmem:[%s2692_s3 + $0x110] sm:$0xff]  ;;  %v1548_v42 = vpack.c.bf16 %v474_v34, %v473_v33  ;;  %v476_v46 = vld [vmem:[%s2692_s3 + $0x28] sm:$0xff]  ;;  %v507_v47 = vld [vmem:[%s2692_s3 + $0x120] sm:$0xff] }
  0x35   :  { %1497 = vmatpush3.bf16.msra.mxu0 %v1496_v38  ;;  %v491_v38 = vld [vmem:[%s2692_s3 + $0xa0] sm:$0xff]  ;;  %v1580_v43 = vpack.c.bf16 %v506_v37, %v505_v35  ;;  %v508_v51 = vld [vmem:[%s2692_s3 + $0x128] sm:$0xff]  ;;  %v526_v55 = vld [vmem:[%s2692_s3 + $0x1b8] sm:$0xff]  ;;  %v1552_v56 = vpack.c.bf16 %v476_v46, %v475_v45 }
  0x36   :  { %1499 = vmatprep.subr.bf16.mxu0 %v1498_v40  ;;  %v523_v40 = vld [vmem:[%s2692_s3 + $0x1a0] sm:$0xff]  ;;  %v1584_v57 = vpack.c.bf16 %v508_v51, %v507_v47  ;;  %v478_v59 = vld [vmem:[%s2692_s3 + $0x38] sm:$0xff]  ;;  %v509_v60 = vld [vmem:[%s2692_s3 + $0x130] sm:$0xff] }
  0x37   :  { %1529 = vmatpush3.bf16.msra.mxu1 %v1528_v39  ;;  %v492_v39 = vld [vmem:[%s2692_s3 + $0xa8] sm:$0xff]  ;;  %v1582_v49 = vpack.c.bf16 %v524_v41, %v523_v40  ;;  %v510_v61 = vld [vmem:[%s2692_s3 + $0x138] sm:$0xff]  ;;  %v495_v62 = vld [vmem:[%s2692_s3 + $0xc0] sm:$0xff] }
  0x38   :  { %1531 = vmatprep.subr.bf16.mxu1 %v1530_v44  ;;  %v1550_v44 = vpack.c.bf16 %v492_v39, %v491_v38  ;;  %v496_v63 = vld [vmem:[%s2692_s3 + $0xc8] sm:$0xff]  ;;  %v1588_v3 = vpack.c.bf16 %v510_v61, %v509_v60  ;;  %v479_v5 = vld [vmem:[%s2692_s3 + $0x40] sm:$0xff]  ;;  %v497_v10 = vld [vmem:[%s2692_s3 + $0xd0] sm:$0xff] }
  0x39   :  { %1501 = vmatpush3.bf16.msra.mxu0 %v1500_v52  ;;  %v493_v52 = vld [vmem:[%s2692_s3 + $0xb0] sm:$0xff]  ;;  %v1558_v4 = vpack.c.bf16 %v496_v63, %v495_v62  ;;  %v511_v7 = vld [vmem:[%s2692_s3 + $0x140] sm:$0xff]  ;;  %v512_v9 = vld [vmem:[%s2692_s3 + $0x148] sm:$0xff] }
  0x3a   :  { %1503 = vmatprep.subr.bf16.mxu0 %v1502_v54  ;;  %v525_v54 = vld [vmem:[%s2692_s3 + $0x1b0] sm:$0xff]  ;;  %v498_v11 = vld [vmem:[%s2692_s3 + $0xd8] sm:$0xff]  ;;  %v1592_v15 = vpack.c.bf16 %v512_v9, %v511_v7  ;;  %v499_v24 = vld [vmem:[%s2692_s3 + $0xe0] sm:$0xff] }
  0x3b   :  { %1533 = vmatpush3.bf16.msra.mxu1 %v1532_v53  ;;  %v494_v53 = vld [vmem:[%s2692_s3 + $0xb8] sm:$0xff]  ;;  %v1562_v16 = vpack.c.bf16 %v498_v11, %v497_v10  ;;  %v481_v18 = vld [vmem:[%s2692_s3 + $0x50] sm:$0xff]  ;;  %v500_v25 = vld [vmem:[%s2692_s3 + $0xe8] sm:$0xff] }
  0x3c   :  { %1535 = vmatprep.subr.bf16.mxu1 %v1534_v58  ;;  %v1554_v58 = vpack.c.bf16 %v494_v53, %v493_v52  ;;  %v513_v20 = vld [vmem:[%s2692_s3 + $0x150] sm:$0xff]  ;;  %v514_v23 = vld [vmem:[%s2692_s3 + $0x158] sm:$0xff]  ;;  %v1566_v34 = vpack.c.bf16 %v500_v25, %v499_v24  ;;  %v483_v35 = vld [vmem:[%s2692_s3 + $0x60] sm:$0xff] }
  0x3d   :  { %1505 = vmatpush3.bf16.msra.mxu0 %v1504_v0  ;;  %v527_v0 = vld [vmem:[%s2692_s3 + $0x1c0] sm:$0xff]  ;;  %v1596_v33 = vpack.c.bf16 %v514_v23, %v513_v20  ;;  %v516_v39 = vld [vmem:[%s2692_s3 + $0x168] sm:$0xff]  ;;  %v501_v40 = vld [vmem:[%s2692_s3 + $0xf0] sm:$0xff] }
  0x3e   :  { %1507 = vmatprep.subr.bf16.mxu0 %v1506_v2  ;;  %v515_v37 = vld [vmem:[%s2692_s3 + $0x160] sm:$0xff]  ;;  %v502_v41 = vld [vmem:[%s2692_s3 + $0xf8] sm:$0xff] }
  0x3f   :  { %1537 = vmatpush3.bf16.msra.mxu1 %v1536_v1  ;;  %v528_v1 = vld [vmem:[%s2692_s3 + $0x1c8] sm:$0xff] }
  0x40   :  { %1539 = vmatprep.subr.bf16.mxu1 %v1538_v6  ;;  %v480_v6 = vld [vmem:[%s2692_s3 + $0x48] sm:$0xff]  ;;  %v1590_v8 = vpack.c.bf16 %v528_v1, %v527_v0 }
  0x41   :  { %1509 = vmatpush3.bf16.msra.mxu0 %v1508_v12  ;;  %v529_v12 = vld [vmem:[%s2692_s3 + $0x1d0] sm:$0xff] }
  0x42   :  { %1543 = vmatprep.subr.bf16.mxu0 %v1542_v14  ;;  %v1560_v14 = vpack.c.bf16 %v480_v6, %v479_v5 }
  0x43   :  { %1541 = vmatpush3.bf16.msra.mxu1 %v1540_v13  ;;  %v530_v13 = vld [vmem:[%s2692_s3 + $0x1d8] sm:$0xff] }
  0x44   :  { %1575 = vmatprep.subr.bf16.mxu1 %v1574_v19  ;;  %388 = vmatmul.mubr.f32.vlgmr.msra.gmra.mrb[2].mxu0 %v2258_v27  ;;  %v482_v19 = vld [vmem:[%s2692_s3 + $0x58] sm:$0xff]  ;;  %v1594_v22 = vpack.c.bf16 %v530_v13, %v529_v12 }
  0x45   :  { %1545 = vmatpush3.bf16.msra.mxu0 %v1544_v28  ;;  %670 = vmatprep.mubr.f32.mxu0 %v1970_v17  ;;  %v477_v17 = vld [vmem:[%s2692_s3 + $0x30] sm:$0xff]  ;;  %v531_v28 = vld [vmem:[%s2692_s3 + $0x1e0] sm:$0xff] }
  0x46   :  { %458 = vmatmul.mubr.f32.vlgmr.msra.gmra.mrb[2].mxu1 %v2263_v29  ;;  %1547 = vmatprep.subr.bf16.mxu0 %v1546_v32  ;;  %v1556_v2 = vpack.c.bf16 %v478_v59, %v477_v17  ;;  %v1564_v32 = vpack.c.bf16 %v482_v19, %v481_v18 }
  0x47   :  { %1577 = vmatpush3.bf16.msra.mxu1 %v1576_v30  ;;  %740 = vmatprep.mubr.f32.mxu1 %v1982_v21  ;;  %v1586_v21 = vpack.c.bf16 %v526_v55, %v525_v54  ;;  %v532_v30 = vld [vmem:[%s2692_s3 + $0x1e8] sm:$0xff] }
  0x48   :  { %1579 = vmatprep.subr.bf16.mxu1 %v1578_v36  ;;  %v484_v36 = vld [vmem:[%s2692_s3 + $0x68] sm:$0xff]  ;;  %v1598_v38 = vpack.c.bf16 %v532_v30, %v531_v28 }
  0x49   :  { %1549 = vmatpush3.bf16.msra.mxu0 %v1548_v42  ;;  %v533_v42 = vld [vmem:[%s2692_s3 + $0x1f0] sm:$0xff] }
  0x4a   :  { %1551 = vmatprep.subr.bf16.mxu0 %v1550_v44  ;;  %v1568_v44 = vpack.c.bf16 %v484_v36, %v483_v35 }
  0x4b   :  { %1581 = vmatpush3.bf16.msra.mxu1 %v1580_v43  ;;  %v534_v43 = vld [vmem:[%s2692_s3 + $0x1f8] sm:$0xff] }
  0x4c   :  { %1583 = vmatprep.subr.bf16.mxu1 %v1582_v49 }
  0x4d   :  { %1553 = vmatpush3.bf16.msra.mxu0 %v1552_v56 }
  0x4e   :  { %1555 = vmatprep.subr.bf16.mxu0 %v1554_v58 }
  0x4f   :  { %1585 = vmatpush3.bf16.msra.mxu1 %v1584_v57 }
  0x50   :  { %1587 = vmatprep.subr.bf16.mxu1 %v1586_v21 }
  0x51   :  { %1557 = vmatpush3.bf16.msra.mxu0 %v1556_v2 }
  0x52   :  { %1559 = vmatprep.subr.bf16.mxu0 %v1558_v4 }
  0x53   :  { %1589 = vmatpush3.bf16.msra.mxu1 %v1588_v3 }
  0x54   :  { %1591 = vmatprep.subr.bf16.mxu1 %v1590_v8 }
  0x55   :  { %1561 = vmatpush3.bf16.msra.mxu0 %v1560_v14 }
  0x56   :  { %1563 = vmatprep.subr.bf16.mxu0 %v1562_v16 }
  0x57   :  { %1593 = vmatpush3.bf16.msra.mxu1 %v1592_v15 }
  0x58   :  { %1595 = vmatprep.subr.bf16.mxu1 %v1594_v22 }
  0x59   :  { %1565 = vmatpush3.bf16.msra.mxu0 %v1564_v32 }
  0x5a   :  { %17 = vsyncpa [#allocation7], 0  ;;  %1567 = vmatprep.subr.bf16.mxu0 %v1566_v34  ;;  %v1600_v45 = vpack.c.bf16 %v516_v39, %v515_v37  ;;  %v1570_v46 = vpack.c.bf16 %v502_v41, %v501_v40  ;;  %v485_v47 = vld [vmem:[%s2692_s3 + $0x70] sm:$0xff]  ;;  %v486_v49 = vld [vmem:[%s2692_s3 + $0x78] sm:$0xff]  ;;  %v1602_v52 = vpack.c.bf16 %v534_v43, %v533_v42  ;;  %vm464_vm0 = vcmask 261120   ;;  %s1742_s13 = smov [#allocation4]  }
  0x5b   :  { %1597 = vmatpush3.bf16.msra.mxu1 %v1596_v33  ;;  %v517_v51 = vld [vmem:[%s2692_s3 + $0x170] sm:$0xff]  ;;  %v518_v53 = vld [vmem:[%s2692_s3 + $0x178] sm:$0xff]  ;;  %v551_v54 = vld [vmem:[%s2692_s3 + $0x280] sm:$0xff]  ;;  %v1572_v58 = vpack.c.bf16 %v486_v49, %v485_v47  ;;  %vm1740_vm1 = vmmov 0   ;;  %s1074_s14 = sshll.u32 %s1742_s13, 4  ;;  %s1075_s14 = int_to_ptr.vmem [resolvable:$true] %s1074_s14 }
  0x5c   :  { %1599 = vmatprep.subr.bf16.mxu1 %v1598_v38  ;;  %v552_v55 = vld [vmem:[%s2692_s3 + $0x288] sm:$0xff]  ;;  %v583_v56 = vld [vmem:[%s2692_s3 + $0x380] sm:$0xff]  ;;  %v1604_v17 = vpack.c.bf16 %v518_v53, %v517_v51  ;;  %v553_v0 = vld [vmem:[%s2692_s3 + $0x290] sm:$0xff]  ;;  %s1691_s15 = scalar_lea.vmem %s1075_s14, 128  ;;  %p1696_p1 = scmp.lt.s32.totalorder %s1075_s14, %s1075_s14 }
  0x5d   :  { %v584_v57 = vld [vmem:[%s2692_s3 + $0x388] sm:$0xff]  ;;  %1569 = vmatpush3.bf16.msra.mxu0 %v1568_v44  ;;  %v1606_v59 = vpack.c.bf16 %v552_v55, %v551_v54  ;;  %v535_v60 = vld [vmem:[%s2692_s3 + $0x200] sm:$0xff]  ;;  %v554_v1 = vld [vmem:[%s2692_s3 + $0x298] sm:$0xff]  ;;  %p1692_p0 = scmp.ne.s32.totalorder %s1075_s14, %s1691_s15  ;;  %p1697_p2 = scmp.lt.s32.totalorder %s1691_s15, %s1691_s15 }
  0x5e   :  { %1571 = vmatprep.subr.bf16.mxu0 %v1570_v46  ;;  %v536_v21 = vld [vmem:[%s2692_s3 + $0x208] sm:$0xff]  ;;  %v567_v61 = vld [vmem:[%s2692_s3 + $0x300] sm:$0xff]  ;;  %v1638_v62 = vpack.c.bf16 %v584_v57, %v583_v56  ;;  %v585_v2 = vld [vmem:[%s2692_s3 + $0x390] sm:$0xff]  ;;  %v1610_v6 = vpack.c.bf16 %v554_v1, %v553_v0 }
  0x5f   :  { %1601 = vmatpush3.bf16.msra.mxu1 %v1600_v45  ;;  %v568_v63 = vld [vmem:[%s2692_s3 + $0x308] sm:$0xff]  ;;  %v586_v3 = vld [vmem:[%s2692_s3 + $0x398] sm:$0xff]  ;;  %v1608_v4 = vpack.c.bf16 %v536_v21, %v535_v60  ;;  %v537_v7 = vld [vmem:[%s2692_s3 + $0x210] sm:$0xff]  ;;  %p1698_p3 = por %p1697_p2, %p1696_p1 }
  0x60   :  { %1603 = vmatprep.subr.bf16.mxu1 %v1602_v52  ;;  %v1640_v5 = vpack.c.bf16 %v568_v63, %v567_v61  ;;  %v538_v8 = vld [vmem:[%s2692_s3 + $0x218] sm:$0xff]  ;;  %v569_v9 = vld [vmem:[%s2692_s3 + $0x310] sm:$0xff]  ;;  %v1642_v10 = vpack.c.bf16 %v586_v3, %v585_v2  ;;  %v555_v12 = vld [vmem:[%s2692_s3 + $0x2a0] sm:$0xff] }
  0x61   :  { %1573 = vmatpush3.bf16.msra.mxu0 %v1572_v58  ;;  %v570_v11 = vld [vmem:[%s2692_s3 + $0x318] sm:$0xff]  ;;  %v556_v13 = vld [vmem:[%s2692_s3 + $0x2a8] sm:$0xff]  ;;  %v587_v14 = vld [vmem:[%s2692_s3 + $0x3a0] sm:$0xff]  ;;  %v1612_v16 = vpack.c.bf16 %v538_v8, %v537_v7  ;;  %p1699_p4 = pnand %p1698_p3, %p1692_p0 }
  0x62   :  { %1607 = vmatprep.subr.bf16.mxu0 %v1606_v59  ;;  %v588_v15 = vld [vmem:[%s2692_s3 + $0x3a8] sm:$0xff]  ;;  %v1644_v18 = vpack.c.bf16 %v570_v11, %v569_v9  ;;  %v1614_v19 = vpack.c.bf16 %v556_v13, %v555_v12  ;;  %v571_v22 = vld [vmem:[%s2692_s3 + $0x320] sm:$0xff]  ;;  %v557_v24 = vld [vmem:[%s2692_s3 + $0x2b0] sm:$0xff] }
  0x63   :  { %1605 = vmatpush3.bf16.msra.mxu1 %v1604_v17  ;;  %v540_v20 = vld [vmem:[%s2692_s3 + $0x228] sm:$0xff]  ;;  %v1646_v23 = vpack.c.bf16 %v588_v15, %v587_v14  ;;  %v558_v25 = vld [vmem:[%s2692_s3 + $0x2b8] sm:$0xff]  ;;  %v589_v28 = vld [vmem:[%s2692_s3 + $0x3b0] sm:$0xff] }
  0x64   :  { %1639 = vmatprep.subr.bf16.mxu1 %v1638_v62  ;;  %671 = vmatmul.mubr.f32.vlgmr.msra.gmra.mrb[4].mxu0 %v2042_v48  ;;  %v539_v48 = vld [vmem:[%s2692_s3 + $0x220] sm:$0xff]  ;;  %v590_v30 = vld [vmem:[%s2692_s3 + $0x3b8] sm:$0xff]  ;;  %v1618_v34 = vpack.c.bf16 %v558_v25, %v557_v24  ;;  %v573_v36 = vld [vmem:[%s2692_s3 + $0x330] sm:$0xff] }
  0x65   :  { %1609 = vmatpush3.bf16.msra.mxu0 %v1608_v4  ;;  %810 = vmatprep.mubr.f32.mxu0 %v2129_v26  ;;  %v1616_v32 = vpack.c.bf16 %v540_v20, %v539_v48  ;;  %v541_v26 = vld [vmem:[%s2692_s3 + $0x230] sm:$0xff]  ;;  %v542_v35 = vld [vmem:[%s2692_s3 + $0x238] sm:$0xff]  ;;  %v559_v38 = vld [vmem:[%s2692_s3 + $0x2c0] sm:$0xff] }
  0x66   :  { %741 = vmatmul.mubr.f32.vlgmr.msra.gmra.mrb[4].mxu1 %v2047_v50  ;;  %1611 = vmatprep.subr.bf16.mxu0 %v1610_v6  ;;  %v572_v50 = vld [vmem:[%s2692_s3 + $0x328] sm:$0xff]  ;;  %v574_v37 = vld [vmem:[%s2692_s3 + $0x338] sm:$0xff]  ;;  %v591_v40 = vld [vmem:[%s2692_s3 + $0x3c0] sm:$0xff]  ;;  %v1620_v42 = vpack.c.bf16 %v542_v35, %v541_v26 }
  0x67   :  { %1641 = vmatpush3.bf16.msra.mxu1 %v1640_v5  ;;  %880 = vmatprep.mubr.f32.mxu1 %v2140_v31  ;;  %v1648_v33 = vpack.c.bf16 %v572_v50, %v571_v22  ;;  %v1650_v31 = vpack.c.bf16 %v590_v30, %v589_v28  ;;  %v560_v39 = vld [vmem:[%s2692_s3 + $0x2c8] sm:$0xff]  ;;  %v1652_v43 = vpack.c.bf16 %v574_v37, %v573_v36  ;;  %v543_v45 = vld [vmem:[%s2692_s3 + $0x240] sm:$0xff]  ;;  %v561_v52 = vld [vmem:[%s2692_s3 + $0x2d0] sm:$0xff] }
  0x68   :  { %1643 = vmatprep.subr.bf16.mxu1 %v1642_v10  ;;  %v592_v41 = vld [vmem:[%s2692_s3 + $0x3c8] sm:$0xff]  ;;  %v1622_v44 = vpack.c.bf16 %v560_v39, %v559_v38  ;;  %v575_v47 = vld [vmem:[%s2692_s3 + $0x340] sm:$0xff]  ;;  %v562_v53 = vld [vmem:[%s2692_s3 + $0x2d8] sm:$0xff] }
  0x69   :  { %1613 = vmatpush3.bf16.msra.mxu0 %v1612_v16  ;;  %v544_v46 = vld [vmem:[%s2692_s3 + $0x248] sm:$0xff]  ;;  %v1654_v49 = vpack.c.bf16 %v592_v41, %v591_v40  ;;  %v593_v54 = vld [vmem:[%s2692_s3 + $0x3d0] sm:$0xff]  ;;  %v594_v55 = vld [vmem:[%s2692_s3 + $0x3d8] sm:$0xff]  ;;  %v1626_v58 = vpack.c.bf16 %v562_v53, %v561_v52 }
  0x6a   :  { %1615 = vmatprep.subr.bf16.mxu0 %v1614_v19  ;;  %v576_v51 = vld [vmem:[%s2692_s3 + $0x348] sm:$0xff]  ;;  %v1624_v56 = vpack.c.bf16 %v544_v46, %v543_v45  ;;  %v545_v17 = vld [vmem:[%s2692_s3 + $0x250] sm:$0xff]  ;;  %v546_v59 = vld [vmem:[%s2692_s3 + $0x258] sm:$0xff]  ;;  %v1658_v21 = vpack.c.bf16 %v594_v55, %v593_v54 }
  0x6b   :  { %1645 = vmatpush3.bf16.msra.mxu1 %v1644_v18  ;;  %v1656_v57 = vpack.c.bf16 %v576_v51, %v575_v47  ;;  %v577_v60 = vld [vmem:[%s2692_s3 + $0x350] sm:$0xff]  ;;  %v578_v61 = vld [vmem:[%s2692_s3 + $0x358] sm:$0xff]  ;;  %v563_v62 = vld [vmem:[%s2692_s3 + $0x2e0] sm:$0xff]  ;;  %v1628_v2 = vpack.c.bf16 %v546_v59, %v545_v17 }
  0x6c   :  { %1647 = vmatprep.subr.bf16.mxu1 %v1646_v23  ;;  %v564_v63 = vld [vmem:[%s2692_s3 + $0x2e8] sm:$0xff]  ;;  %v595_v0 = vld [vmem:[%s2692_s3 + $0x3e0] sm:$0xff]  ;;  %v1660_v3 = vpack.c.bf16 %v578_v61, %v577_v60  ;;  %v565_v10 = vld [vmem:[%s2692_s3 + $0x2f0] sm:$0xff]  ;;  %v1741_v60 = vmov 0.0  }
  0x6d   :  { %1617 = vmatpush3.bf16.msra.mxu0 %v1616_v32  ;;  %v596_v1 = vld [vmem:[%s2692_s3 + $0x3e8] sm:$0xff]  ;;  %v1630_v4 = vpack.c.bf16 %v564_v63, %v563_v62  ;;  %v547_v5 = vld [vmem:[%s2692_s3 + $0x260] sm:$0xff]  ;;  %v566_v11 = vld [vmem:[%s2692_s3 + $0x2f8] sm:$0xff] }
  0x6e   :  { %1619 = vmatprep.subr.bf16.mxu0 %v1618_v34  ;;  %v548_v6 = vld [vmem:[%s2692_s3 + $0x268] sm:$0xff]  ;;  %v579_v7 = vld [vmem:[%s2692_s3 + $0x360] sm:$0xff]  ;;  %v1662_v8 = vpack.c.bf16 %v596_v1, %v595_v0  ;;  %v597_v12 = vld [vmem:[%s2692_s3 + $0x3f0] sm:$0xff]  ;;  %v1634_v16 = vpack.c.bf16 %v566_v11, %v565_v10 }
  0x6f   :  { %1649 = vmatpush3.bf16.msra.mxu1 %v1648_v33  ;;  %v580_v9 = vld [vmem:[%s2692_s3 + $0x368] sm:$0xff]  ;;  %v598_v13 = vld [vmem:[%s2692_s3 + $0x3f8] sm:$0xff]  ;;  %v1632_v14 = vpack.c.bf16 %v548_v6, %v547_v5  ;;  %v549_v18 = vld [vmem:[%s2692_s3 + $0x270] sm:$0xff] }
  0x70   :  { %1651 = vmatprep.subr.bf16.mxu1 %v1650_v31  ;;  %v1664_v15 = vpack.c.bf16 %v580_v9, %v579_v7  ;;  %v550_v19 = vld [vmem:[%s2692_s3 + $0x278] sm:$0xff]  ;;  %v1666_v48 = vpack.c.bf16 %v598_v13, %v597_v12  ;;  %v581_v20 = vld [vmem:[%s2692_s3 + $0x370] sm:$0xff]  ;;  %v1096_v25 = vld [vmem:[%s2691_s2] ss:$0 sm:$0xff] }
  0x71   :  { %1621 = vmatpush3.bf16.msra.mxu0 %v1620_v42  ;;  %v582_v22 = vld [vmem:[%s2692_s3 + $0x378] sm:$0xff]  ;;  %v1636_v23 = vpack.c.bf16 %v550_v19, %v549_v18  ;;  %v894_v53 = vld [vmem:[%s2694_s5] sm:$0xff]  ;;  %v895_v54 = vld [vmem:[%s2694_s5 + $0x8] sm:$0xff] }
  0x72   :  { %1623 = vmatprep.subr.bf16.mxu0 %v1622_v44  ;;  %v1668_v50 = vpack.c.bf16 %v582_v22, %v581_v20  ;;  %v1097_v44 = vld [vmem:[%s2693_s4] ss:$0 sm:$0xff]  ;;  %v1671_v55 = vpack.c.bf16 %v895_v54, %v894_v53  ;;  %v897_v17 = vld [vmem:[%s2694_s5 + $0x18] sm:$0xff]  ;;  %v983_v7 = vld [vmem:[%s2696_s7 + $0x8] sm:$0xff] }
  0x73   :  { %1653 = vmatpush3.bf16.msra.mxu1 %v1652_v43  ;;  %v982_v6 = vld [vmem:[%s2696_s7] sm:$0xff]  ;;  %v984_v9 = vld [vmem:[%s2696_s7 + $0x10] sm:$0xff]  ;;  %v985_v10 = vld [vmem:[%s2696_s7 + $0x18] sm:$0xff] }
  0x74   :  { %1655 = vmatprep.subr.bf16.mxu1 %v1654_v49  ;;  %v1680_v11 = vpack.c.bf16 %v985_v10, %v984_v9  ;;  %v1098_v20 = vld [vmem:[%s2695_s6] ss:$0 sm:$0xff] }
  0x75   :  { %1625 = vmatpush3.bf16.msra.mxu0 %v1624_v56 }
  0x76   :  { %1627 = vmatprep.subr.bf16.mxu0 %v1626_v58  ;;  %v896_v58 = vld [vmem:[%s2694_s5 + $0x10] sm:$0xff] }
  0x77   :  { %1657 = vmatpush3.bf16.msra.mxu1 %v1656_v57  ;;  %v1739_v57 = vmov 0.0|0.0   ;;  %v1674_v59 = vpack.c.bf16 %v897_v17, %v896_v58 }
  0x78   :  { %1659 = vmatprep.subr.bf16.mxu1 %v1658_v21 }
  0x79   :  { %1629 = vmatpush3.bf16.msra.mxu0 %v1628_v2 }
  0x7a   :  { %1631 = vmatprep.subr.bf16.mxu0 %v1630_v4 }
  0x7b   :  { %1661 = vmatpush3.bf16.msra.mxu1 %v1660_v3 }
  0x7c   :  { %1663 = vmatprep.subr.bf16.mxu1 %v1662_v8  ;;  %v1677_v8 = vpack.c.bf16 %v983_v7, %v982_v6 }
  0x7d   :  { %1633 = vmatpush3.bf16.msra.mxu0 %v1632_v14 }
  0x7e   :  { %1635 = vmatprep.subr.bf16.mxu0 %v1634_v16 }
  0x7f   :  { %1665 = vmatpush3.bf16.msra.mxu1 %v1664_v15 }
  0x80   :  { %1667 = vmatprep.subr.bf16.mxu1 %v1666_v48 }
  0x81   :  { %1637 = vmatpush3.bf16.msra.mxu0 %v1636_v23 }
  0x82   :  { %1670 = vmatprep.subr.bf16.mxu0 %v1739_v57 }
  0x83   :  { %1669 = vmatpush3.bf16.msra.mxu1 %v1668_v50 }
  0x84   :  { %811 = vmatmul.mubr.f32.vlgmr.msra.gmra.mrb[6].mxu0 %v2258_v27  ;;  %1676 = vmatprep.subr.bf16.mxu1 %v1739_v57 }
  0x85   :  { %1672 = vmatpush3.bf16.msra.mxu0 %v1671_v55  ;;  %1400 = vmatprep.mubr.msk.f32.mxu0 %vm1740_vm1, %v1741_v60 }
  0x86   :  { %881 = vmatmul.mubr.f32.vlgmr.msra.gmra.mrb[6].mxu1 %v2263_v29  ;;  %1673 = vmatprep.subr.bf16.mxu0 %v1739_v57 }
  0x87   :  { %1411 = vmatprep.mubr.msk.f32.mxu1 %vm1740_vm1, %v1741_v60  ;;  %1678 = vmatpush3.bf16.msra.mxu1 %v1677_v8 }
  0x88   :  { %1679 = vmatprep.subr.bf16.mxu1 %v1739_v57 }
  0x89   :  { %1675 = vmatpush3.bf16.msra.mxu0 %v1674_v59 }
  0x8b   :  { %1681 = vmatpush3.bf16.msra.mxu1 %v1680_v11 }
  0xf7   :  { %v1134_v24 = vpop.f32.mrb[0].mxu0 }
  0xf8   :  { %v1135_v28 = vpop.f32.mrb[1].mxu0 }
  0xf9   :  { %v1169_v30 = vpop.f32.mrb[0].mxu1  ;;  %v1136_v32 = vadd.f32 %v1135_v28, %v1134_v24 }
  0xfa   :  { %v1170_v33 = vpop.f32.mrb[1].mxu1 }
  0xfb   :  { %v1171_v34 = vadd.f32 %v1170_v33, %v1169_v30  ;;  %v250_v26 = vadd.f32 %v1136_v32, %v1096_v25 }
  0xfd   :  { %v320_v35 = vadd.f32 %v1171_v34, %v250_v26 }
 0x117   :  { %v1204_v36 = vpop.f32.mrb[2].mxu0 }
 0x118   :  { %v1205_v31 = vpop.f32.mrb[3].mxu0 }
 0x119   :  { %v1239_v37 = vpop.f32.mrb[2].mxu1  ;;  %v1206_v38 = vadd.f32 %v1205_v31, %v1204_v36 }
 0x11a   :  { %v1240_v39 = vpop.f32.mrb[3].mxu1 }
 0x11b   :  { %v1241_v27 = vadd.f32 %v1240_v39, %v1239_v37  ;;  %v390_v40 = vadd.f32 %v1206_v38, %v320_v35 }
 0x11d   :  { %v460_v29 = vadd.f32 %v1241_v27, %v390_v40 }
 0x11f   :  { %v463_v41 = vmul.f32 %v460_v29, %v460_v29 }
 0x121   :  { %v465_v42 = vsel %vm464_vm0, %v463_v41, 0.0 }
 0x122   :  { %466 = vadd.xlane.f32.xlu0 %v465_v42 }
 0x137   :  { %v1274_v43 = vpop.f32.mrb[4].mxu0 }
 0x138   :  { %v1275_v45 = vpop.f32.mrb[5].mxu0 }
 0x139   :  { %v1309_v46 = vpop.f32.mrb[4].mxu1  ;;  %v1276_v47 = vadd.f32 %v1275_v45, %v1274_v43 }
 0x13a   :  { %v1310_v49 = vpop.f32.mrb[5].mxu1 }
 0x13b   :  { %v1311_v51 = vadd.f32 %v1310_v49, %v1309_v46  ;;  %v673_v52 = vadd.f32 %v1276_v47, %v1097_v44 }
 0x13d   :  { %v743_v56 = vadd.f32 %v1311_v51, %v673_v52 }
 0x157   :  { %v1344_v21 = vpop.f32.mrb[6].mxu0 }
 0x158   :  { %v1345_v61 = vpop.f32.mrb[7].mxu0 }
 0x159   :  { %v1379_v62 = vpop.f32.mrb[6].mxu1  ;;  %v1346_v63 = vadd.f32 %v1345_v61, %v1344_v21 }
 0x15a   :  { %v1380_v0 = vpop.f32.mrb[7].mxu1 }
 0x15b   :  { %v1381_v1 = vadd.f32 %v1380_v0, %v1379_v62  ;;  %v813_v2 = vadd.f32 %v1346_v63, %v743_v56 }
 0x15d   :  { %v883_v3 = vadd.f32 %v1381_v1, %v813_v2 }
 0x15f   :  { %v886_v4 = vmul.f32 %v883_v3, %v883_v3 }
 0x161   :  { %v887_v5 = vsel %vm464_vm0, %v886_v4, 0.0 }
 0x162   :  { %888 = vadd.xlane.f32.xlu0 %v887_v5 }
 0x1af   :  { %v467_v12 = vpop.xlane.xlu0 %466 }
 0x1b0   :  { %1687 = vrsqrt.f32 %v467_v12 }
 0x1ba   :  { %v1688_v13 = vpop.eup %1687 }
 0x1bb   :  { %v469_v14 = vmul.f32 %v1688_v13, %v460_v29 }
 0x1bd   :  { %470 = vst.msk [vmem:[#allocation2] sm:$0xff] %vm464_vm0, %v469_v14 }
 0x1c4   :  { %v893_v15 = vld [vmem:[#allocation2] sm:$0xff] }
 0x1c5   :  { %1401 = vmatmul.mubr.msk.f32.vlgmr.msra.gmra.mrb[8].mxu0 %vm464_vm0, %v893_v15 }
 0x1ef   :  { %v889_v16 = vpop.xlane.xlu0 %888 }
 0x1f0   :  { %1689 = vrsqrt.f32 %v889_v16 }
 0x1fa   :  { %v1690_v18 = vpop.eup %1689 }
 0x1fb   :  { %v891_v19 = vmul.f32 %v1690_v18, %v883_v3 }
 0x1fd   :  { %892 = vst.msk [vmem:[#allocation3] sm:$0xff] %vm464_vm0, %v891_v19 }
 0x204   :  { %v981_v48 = vld [vmem:[#allocation3] sm:$0xff] }
 0x205   :  { %1412 = vmatmul.mubr.msk.f32.vlgmr.msra.gmra.mrb[8].mxu1 %vm464_vm0, %v981_v48 }
 0x298   :  { %v975_v22 = vpop.f32.mrb[8].mxu0 }
 0x299   :  { %v976_v23 = vadd.f32 %v1098_v20, %v975_v22  ;;  %v1402_v50 = vpop.f32.mrb[9].mxu0 }
 0x29b   :  { %v979_v24 = vmax.f32 %v976_v23, 0.0 }
 0x29d   :  { %980 = vst [vmem:[#allocation4] sm:$0xff] %v979_v24 }
 0x29e   :  { %1702 = shalt.err (!%p1699_p4)
}
 0x29f   :  { %s1703_s18 = scalar_lea.hbm %s2698_s9, 128 }
 0x2a0   :  { %p1704_p5 = scmp.ne.s32.totalorder %s2698_s9, %s1703_s18  ;;  %p1707_p6 = scmp.lt.u32.totalorder %s1703_s18, %s2698_s9 }
 0x2a2   :  { %p1709_p7 = pnand %p1707_p6, %p1704_p5 }
 0x2a4   :  { %1712 = shalt.err (!%p1709_p7)
}
 0x2a5   :  { %1077 = dma.vmem_to_hbm [thread:$0]  %s1075_s14, 128, %s2698_s9, [#allocation5]   ;;  %v1100_v25 = vld [vmem:[%s2697_s8] ss:$0 sm:$0xff] }
 0x2a6   :  { %s1743_s24 = smov [#allocation6]  }
 0x2a7   :  { %s1084_s4 = sshll.u32 %s1743_s24, 4  ;;  %s1085_s4 = int_to_ptr.vmem [resolvable:$true] %s1084_s4 }
 0x2a8   :  { %s1713_s25 = scalar_lea.vmem %s1085_s4, 128  ;;  %p1718_p9 = scmp.lt.s32.totalorder %s1085_s4, %s1085_s4 }
 0x2a9   :  { %p1714_p8 = scmp.ne.s32.totalorder %s1085_s4, %s1713_s25  ;;  %p1719_p10 = scmp.lt.s32.totalorder %s1713_s25, %s1713_s25 }
 0x2ab   :  { %p1720_p11 = por %p1719_p10, %p1718_p9 }
 0x2ad   :  { %p1721_p12 = pnand %p1720_p11, %p1714_p8 }
 0x2d8   :  { %v1062_v28 = vpop.f32.mrb[8].mxu1 }
 0x2d9   :  { %v1063_v30 = vadd.f32 %v1100_v25, %v1062_v28  ;;  %v1413_v32 = vpop.f32.mrb[9].mxu1 }
 0x2db   :  { %v1066_v33 = vmax.f32 %v1063_v30, 0.0 }
 0x2dd   :  { %1067 = vst [vmem:[#allocation6] sm:$0xff] %v1066_v33 }
 0x2de   :  { %1724 = shalt.err (!%p1721_p12)
}
 0x2df   :  { %s1725_s5 = scalar_lea.hbm %s2699_s10, 128 }
 0x2e0   :  { %p1726_p13 = scmp.ne.s32.totalorder %s2699_s10, %s1725_s5  ;;  %p1729_p0 = scmp.lt.u32.totalorder %s1725_s5, %s2699_s10 }
 0x2e2   :  { %p1731_p1 = pnand %p1729_p0, %p1726_p13 }
 0x2e4   :  { %1734 = shalt.err (!%p1731_p1)
}
 0x2e5   :  { %1087 = dma.vmem_to_hbm [thread:$0]  %s1085_s4, 128, %s2699_s10, [#allocation7]  }
 0x2e6   :  { %1735 = dma.done.wait [#allocation5], 128  }
 0x2e7   :  { %1736 = vsyncadd [#allocation5], 4294967168 }
 0x2e8   :  { %1737 = dma.done.wait [#allocation7], 128  }
 0x2e9   :  { %1738 = vsyncadd [#allocation7], 4294967168 }
 0x2ea   :  { %1094 = vsyncpa [#allocation5], 1 }
 0x2eb   :  { %1095 = vsyncpa [#allocation7], 1 }

</bundles_post_ra>
